<compile_context>
chip_gen: v7x
topology: tpu7x:2x2x1
jax: 0.10.0
libtpu: 0.0.40
codegen_flags: <defaults>
</compile_context>

<pallas_src>
import functools

import jax
import jax.numpy as jnp
from jax.experimental import pallas as pl
from jax.experimental.pallas import tpu as pltpu


# ----------------------------- config ---------------------------------------
_VMEM_LIMIT_BYTES = 48 * 1024 * 1024   # safe on v5e/v6e (128 MiB) and v7x (64 MiB)
_K_TILE_MAX = 2048                     # tile K above this (f32 acc scratch keeps it exact)
_RESIDENT_W_MAX_BYTES = 4 * 1024 * 1024  # weight kept fully VMEM-resident below this


def autopad(k, p=None):
    if p is None:
        p = k // 2 if isinstance(k, int) else [x // 2 for x in k]
    return p


def _round_up(x, m):
    return ((x + m - 1) // m) * m


def _silu_f32(r):
    # x * sigmoid(x); divide goes to the EUP slot via approx reciprocal.
    return r * pl.reciprocal(1.0 + jnp.exp(-r), approx=True)


# ----------------------------- kernels ---------------------------------------
def _conv_row_kernel(x_ref, w_ref, bias_ref, o_ref, acc_ref, *, k, Wo, C1, apply_act):
    """One padded NHWC input row -> one output row. Grid = (N, Ho, k); ki is the
    reduction axis. Weight block is the FULL folded weight (constant index map ->
    loaded into VMEM once and reused)."""
    ki = pl.program_id(2)

    @pl.when(ki == 0)
    def _init():
        acc_ref[...] = jnp.zeros_like(acc_ref)

    # stride == 1 on this path: the kj-th tap is just a shifted window of the row.
    for kj in range(k):
        a = x_ref[0, 0, kj:kj + Wo, :]                       # (Wo, C1) bf16
        wkj = w_ref[ki, kj * C1:(kj + 1) * C1, :]            # (C1, C2p) bf16
        acc_ref[...] += jnp.dot(a, wkj, preferred_element_type=jnp.float32)

    @pl.when(ki == k - 1)
    def _fin():
        r = acc_ref[...] + bias_ref[...]                     # folded-BN bias (f32)
        if apply_act:
            r = _silu_f32(r)
        o_ref[0, 0] = r.astype(o_ref.dtype)


def _matmul_bias_act_kernel(a_ref, b_ref, bias_ref, o_ref, acc_ref, *, apply_act):
    """Tiled matmul with f32 accumulator scratch; bias + SiLU epilogue on last K step."""
    kk = pl.program_id(2)

    @pl.when(kk == 0)
    def _init():
        acc_ref[...] = jnp.zeros_like(acc_ref)

    acc_ref[...] += jnp.dot(a_ref[...], b_ref[...], preferred_element_type=jnp.float32)

    @pl.when(kk == pl.num_programs(2) - 1)
    def _fin():
        r = acc_ref[...] + bias_ref[...]
        if apply_act:
            r = _silu_f32(r)
        o_ref[...] = r.astype(o_ref.dtype)


# ----------------------------- pallas_call wrappers --------------------------
def _fused_matmul(a, b, bias, out_dtype, apply_act, tm, tn):
    """a: (M, K) compute-dtype, b: (K, Np) compute-dtype (Np % tn == 0),
    bias: (1, Np) f32.  Returns (M, Np) out_dtype.  No M padding (partial last
    M tile is handled by Pallas; callers slice garbage rows off)."""
    M, K = a.shape
    Kb, Np = b.shape
    assert Kb == K and Np % tn == 0

    if K <= _K_TILE_MAX:
        tk, Kp = K, K
    else:
        tk = _K_TILE_MAX
        Kp = _round_up(K, tk)
        a = jnp.pad(a, ((0, 0), (0, Kp - K)))        # zero pad contributes nothing
        b = jnp.pad(b, ((0, Kp - K), (0, 0)))

    grid = (pl.cdiv(M, tm), Np // tn, Kp // tk)

    return pl.pallas_call(
        functools.partial(_matmul_bias_act_kernel, apply_act=apply_act),
        out_shape=jax.ShapeDtypeStruct((M, Np), out_dtype),
        grid_spec=pltpu.PrefetchScalarGridSpec(
            num_scalar_prefetch=0,
            grid=grid,
            in_specs=[
                pl.BlockSpec((tm, tk), lambda i, j, kk: (i, kk)),   # activations / patches
                pl.BlockSpec((tk, tn), lambda i, j, kk: (kk, j)),   # folded weights
                pl.BlockSpec((1, tn), lambda i, j, kk: (0, j)),     # folded bias
            ],
            out_specs=pl.BlockSpec((tm, tn), lambda i, j, kk: (i, j)),
            scratch_shapes=[pltpu.VMEM((tm, tn), jnp.float32)],
        ),
        compiler_params=pltpu.CompilerParams(
            dimension_semantics=("parallel", "parallel", "arbitrary"),
            vmem_limit_bytes=_VMEM_LIMIT_BYTES,
        ),
    )(a, b, bias)


def _conv_rowwise(x_pad_nhwc, w_kkc, bias, out_dtype, apply_act, N, Ho, Wo, k, C1, C2p):
    """im2col-free conv for stride 1: grid (N, Ho, k); ki is the reduction axis."""
    W_pad = x_pad_nhwc.shape[2]
    w_r = w_kkc.reshape(k, k * C1, C2p)

    return pl.pallas_call(
        functools.partial(_conv_row_kernel, k=k, Wo=Wo, C1=C1, apply_act=apply_act),
        out_shape=jax.ShapeDtypeStruct((N, Ho, Wo, C2p), out_dtype),
        grid_spec=pltpu.PrefetchScalarGridSpec(
            num_scalar_prefetch=0,
            grid=(N, Ho, k),
            in_specs=[
                # one padded input row per step (s == 1 => row index = ho + ki)
                pl.BlockSpec((1, 1, W_pad, C1), lambda n, ho, ki: (n, ho + ki, 0, 0)),
                # full folded weight, constant index map -> stays resident in VMEM
                pl.BlockSpec((k, k * C1, C2p), lambda n, ho, ki: (0, 0, 0)),
                pl.BlockSpec((1, C2p), lambda n, ho, ki: (0, 0)),
            ],
            out_specs=pl.BlockSpec((1, 1, Wo, C2p), lambda n, ho, ki: (n, ho, 0, 0)),
            scratch_shapes=[pltpu.VMEM((Wo, C2p), jnp.float32)],
        ),
        compiler_params=pltpu.CompilerParams(
            dimension_semantics=("parallel", "parallel", "arbitrary"),
            vmem_limit_bytes=_VMEM_LIMIT_BYTES,
        ),
    )(x_pad_nhwc, w_r, bias)


# ----------------------------- public entry point ----------------------------
def conv_bn_silu(x, w, gamma, beta, running_mean, running_var, *,
                 eps=1e-5, stride=1, padding=None, groups=1, act=True,
                 compute_dtype=jnp.bfloat16, tm=256, tn=None):
    """YOLOv7 Conv.forward: SiLU(BatchNorm2d(Conv2d(x, w, bias=False))).

    x: (N, C1, H, W) NCHW; w: (C2, C1, k, k); BN params: (C2,). Returns NCHW.
    """
    if groups != 1:
        # TODO(synk): grouped convolution (g > 1) not implemented in the Pallas path.
        raise NotImplementedError("groups != 1 is not supported")
    if act is True:
        apply_act = True
    elif act is False or act is None:
        apply_act = False
    else:
        # TODO(synk): arbitrary activation modules not supported; only SiLU / Identity.
        raise NotImplementedError("custom activation modules are not supported")

    N, C1, H, W = x.shape
    C2, C1w, kh, kw = w.shape
    assert C1w == C1 and kh == kw
    k, s = kh, stride
    p = autopad(k, padding)
    Ho = (H + 2 * p - k) // s + 1
    Wo = (W + 2 * p - k) // s + 1

    # ---- fold BN (running stats) into conv weight + per-channel bias ----------
    inv_std = jax.lax.rsqrt(running_var.astype(jnp.float32) + eps)
    scale = gamma.astype(jnp.float32) * inv_std                       # (C2,)
    w_f = w.astype(jnp.float32) * scale[:, None, None, None]          # (C2,C1,k,k)
    b_f = beta.astype(jnp.float32) - running_mean.astype(jnp.float32) * scale

    # lane-dense output channel padding
    if tn is None:
        tn = 256 if C2 > 128 else 128
    C2p = _round_up(C2, tn)
    bias_pad = jnp.pad(b_f, (0, C2p - C2)).reshape(1, C2p)            # f32

    # folded weight as a (ki,kj,c1)-major matrix, bf16 on the MXU
    w_kkc = jnp.pad(w_f.transpose(2, 3, 1, 0).reshape(k * k * C1, C2),
                    ((0, 0), (0, C2p - C2))).astype(compute_dtype)    # (k*k*C1, C2p)

    x_nhwc = jnp.transpose(x, (0, 2, 3, 1)).astype(compute_dtype)     # channels-last
    out_dtype = x.dtype

    if k == 1:
        # pointwise conv: pure matmul, no im2col, no M padding
        xs = x_nhwc[:, ::s, ::s, :] if s > 1 else x_nhwc
        a = xs.reshape(N * Ho * Wo, C1)
        y2 = _fused_matmul(a, w_kkc, bias_pad, out_dtype, apply_act, tm, tn)
        y = y2[:, :C2].reshape(N, Ho, Wo, C2)
    elif s == 1 and (w_kkc.size * w_kkc.dtype.itemsize) <= _RESIDENT_W_MAX_BYTES:
        # im2col-free row-wise conv with the weight fully resident in VMEM
        x_pad = jnp.pad(x_nhwc, ((0, 0), (p, p), (p, p), (0, 0)))
        y4 = _conv_rowwise(x_pad, w_kkc, bias_pad, out_dtype, apply_act,
                           N, Ho, Wo, k, C1, C2p)
        y = y4[..., :C2]
    else:
        # fallback (strided k>1 convs / very large weights): im2col on the NHWC,
        # bf16 patches, single fused matmul, no M padding.
        x_pad = jnp.pad(x_nhwc, ((0, 0), (p, p), (p, p), (0, 0)))
        cols = []
        for ki in range(k):
            for kj in range(k):
                cols.append(x_pad[:, ki:ki + s * Ho:s, kj:kj + s * Wo:s, :])
        a = jnp.stack(cols, axis=3).reshape(N * Ho * Wo, k * k * C1)
        y2 = _fused_matmul(a, w_kkc, bias_pad, out_dtype, apply_act, tm, tn)
        y = y2[:, :C2].reshape(N, Ho, Wo, C2)

    # NOTE: kept only to honour the PyTorch module's NCHW contract; channels-last
    # consumers should take `y` directly and skip this relayout.
    return jnp.transpose(y, (0, 3, 1, 2))


# ----------------------------- reference & test -------------------------------
def _reference(x, w, gamma, beta, running_mean, running_var, eps, s, p, act):
    y = jax.lax.conv_general_dilated(
        x, w, window_strides=(s, s), padding=[(p, p), (p, p)],
        dimension_numbers=("NCHW", "OIHW", "NCHW"),
        precision=jax.lax.Precision.HIGHEST)
    scale = gamma / jnp.sqrt(running_var + eps)
    y = y * scale[None, :, None, None] + (beta - running_mean * scale)[None, :, None, None]
    if act:
        y = y * (1.0 / (1.0 + jnp.exp(-y)))
    return y


if __name__ == "__main__":
    key = jax.random.PRNGKey(0)
    k_x, k_w, k_g, k_b, k_m, k_v, k_w2, k_w3 = jax.random.split(key, 8)

    N, C1, C2, H, W = 2, 4, 8, 16, 16
    eps = 1e-5

    x = jax.random.normal(k_x, (N, C1, H, W), dtype=jnp.float32)
    gamma = 1.0 + 0.1 * jax.random.normal(k_g, (C2,), dtype=jnp.float32)
    beta = 0.1 * jax.random.normal(k_b, (C2,), dtype=jnp.float32)
    running_mean = 0.1 * jax.random.normal(k_m, (C2,), dtype=jnp.float32)
    running_var = jnp.abs(1.0 + 0.1 * jax.random.normal(k_v, (C2,), dtype=jnp.float32))

    # bf16 MXU operands vs f32/HIGHEST reference -> loosened tolerance
    TOL = 3e-2

    # Case 1: Conv(c1, c2, k=3, s=1)  -> autopad=1, im2col-free row-wise path
    w3 = 0.1 * jax.random.normal(k_w, (C2, C1, 3, 3), dtype=jnp.float32)
    y = conv_bn_silu(x, w3, gamma, beta, running_mean, running_var, eps=eps, stride=1)
    y = jax.block_until_ready(y)
    y_ref = _reference(x, w3, gamma, beta, running_mean, running_var, eps, 1, autopad(3), True)
    assert y.shape == y_ref.shape
    assert jnp.allclose(y, y_ref, atol=TOL, rtol=TOL)

    # Case 2: default Conv(c1, c2) i.e. k=1, s=1 -> pointwise matmul path
    w1 = 0.1 * jax.random.normal(k_w2, (C2, C1, 1, 1), dtype=jnp.float32)
    y1 = conv_bn_silu(x, w1, gamma, beta, running_mean, running_var, eps=eps, stride=1)
    y1 = jax.block_until_ready(y1)
    y1_ref = _reference(x, w1, gamma, beta, running_mean, running_var, eps, 1, autopad(1), True)
    assert y1.shape == y1_ref.shape
    assert jnp.allclose(y1, y1_ref, atol=TOL, rtol=TOL)

    # Case 3: Conv(c1, c2, k=3, s=2) -> strided downsample, im2col fallback path
    w3s = 0.1 * jax.random.normal(k_w3, (C2, C1, 3, 3), dtype=jnp.float32)
    y2 = conv_bn_silu(x, w3s, gamma, beta, running_mean, running_var, eps=eps, stride=2)
    y2 = jax.block_until_ready(y2)
    y2_ref = _reference(x, w3s, gamma, beta, running_mean, running_var, eps, 2, autopad(3), True)
    assert y2.shape == y2_ref.shape
    assert jnp.allclose(y2, y2_ref, atol=TOL, rtol=TOL)

    print("KERNEL_OK")
</pallas_src>

<mosaic_0001>
module attributes {stable_mosaic.version = 11 : i64} {
  func.func @_conv_row_kernel(%arg0: i32, %arg1: i32, %arg2: i32, %arg3: memref<1x1x18x4xbf16, #tpu.memory_space<vmem>>, %arg4: memref<3x12x128xbf16, #tpu.memory_space<vmem>>, %arg5: memref<1x128xf32, #tpu.memory_space<vmem>>, %arg6: memref<1x1x16x128xf32, #tpu.memory_space<vmem>>, %arg7: memref<16x128xf32, #tpu.memory_space<vmem>>) attributes {dimension_semantics = [#tpu.dimension_semantics<parallel>, #tpu.dimension_semantics<parallel>, #tpu.dimension_semantics<arbitrary>], iteration_bounds = array<i64: 2, 16, 3>, scalar_prefetch = 0 : i64, scratch_operands = 1 : i64, tpu.core_type = #tpu.core_type<tc>, window_params = [{transform_indices = @transform_0, window_bounds = array<i64: 1, 1, 18, 4>}, {pipeline_mode = #tpu.pipeline_mode<synchronous>, transform_indices = @transform_1, window_bounds = array<i64: 3, 12, 128>}, {pipeline_mode = #tpu.pipeline_mode<synchronous>, transform_indices = @transform_2, window_bounds = array<i64: 1, 128>}, {transform_indices = @transform_3, window_bounds = array<i64: 1, 1, 16, 128>}]} {
    %c0_i32 = arith.constant 0 : i32
    %0 = arith.cmpi eq, %arg2, %c0_i32 : i32
    %1 = arith.extui %0 : i1 to i32
    %c0_i32_0 = arith.constant 0 : i32
    %2 = arith.cmpi ne, %1, %c0_i32_0 : i32
    scf.if %2 {
      %cst_29 = arith.constant 0.000000e+00 : f32
      %33 = vector.broadcast %cst_29 : f32 to vector<16x128xf32>
      %c0_30 = arith.constant 0 : index
      %c0_31 = arith.constant 0 : index
      %34 = vector.load %arg7[%c0_30, %c0_31] : memref<16x128xf32, #tpu.memory_space<vmem>>, vector<16x128xf32>
      tpu.vector_store %arg7[%c0_30, %c0_31], %33 {strides = array<i32>} : memref<16x128xf32, #tpu.memory_space<vmem>>, vector<16x128xf32>,
    } else {
    }
    %c0 = arith.constant 0 : index
    %c0_1 = arith.constant 0 : index
    %c0_2 = arith.constant 0 : index
    %c0_3 = arith.constant 0 : index
    %3 = vector.load %arg3[%c0, %c0_1, %c0_2, %c0_3] : memref<1x1x18x4xbf16, #tpu.memory_space<vmem>>, vector<1x1x16x4xbf16>
    %4 = vector.shape_cast %3 : vector<1x1x16x4xbf16> to vector<16x4xbf16>
    %5 = arith.index_cast %arg2 : i32 to index
    %c0_4 = arith.constant 0 : index
    %c0_5 = arith.constant 0 : index
    %6 = vector.load %arg4[%5, %c0_4, %c0_5] : memref<3x12x128xbf16, #tpu.memory_space<vmem>>, vector<1x4x128xbf16>
    %7 = vector.shape_cast %6 : vector<1x4x128xbf16> to vector<4x128xbf16>
    %c0_6 = arith.constant 0 : index
    %c0_7 = arith.constant 0 : index
    %8 = vector.load %arg7[%c0_6, %c0_7] : memref<16x128xf32, #tpu.memory_space<vmem>>, vector<16x128xf32>
    %cst = arith.constant dense<0.000000e+00> : vector<16x128xf32>
    %9 = tpu.matmul %4, %7, %cst {dimension_numbers = #tpu.dot_dimension_numbers<[1], [0], [0], [1], [0, 0, 1, 1], [], []>} : vector<16x4xbf16>, vector<4x128xbf16>, vector<16x128xf32> -> vector<16x128xf32>
    %10 = arith.addf %8, %9 : vector<16x128xf32>
    %c0_8 = arith.constant 0 : index
    %c0_9 = arith.constant 0 : index
    %11 = vector.load %arg7[%c0_8, %c0_9] : memref<16x128xf32, #tpu.memory_space<vmem>>, vector<16x128xf32>
    tpu.vector_store %arg7[%c0_8, %c0_9], %10 {strides = array<i32>} : memref<16x128xf32, #tpu.memory_space<vmem>>, vector<16x128xf32>,
    %c0_10 = arith.constant 0 : index
    %c0_11 = arith.constant 0 : index
    %c1 = arith.constant 1 : index
    %c0_12 = arith.constant 0 : index
    %12 = vector.load %arg3[%c0_10, %c0_11, %c1, %c0_12] : memref<1x1x18x4xbf16, #tpu.memory_space<vmem>>, vector<1x1x16x4xbf16>
    %13 = vector.shape_cast %12 : vector<1x1x16x4xbf16> to vector<16x4xbf16>
    %14 = arith.index_cast %arg2 : i32 to index
    %c4 = arith.constant 4 : index
    %c0_13 = arith.constant 0 : index
    %15 = vector.load %arg4[%14, %c4, %c0_13] : memref<3x12x128xbf16, #tpu.memory_space<vmem>>, vector<1x4x128xbf16>
    %16 = vector.shape_cast %15 : vector<1x4x128xbf16> to vector<4x128xbf16>
    %c0_14 = arith.constant 0 : index
    %c0_15 = arith.constant 0 : index
    %17 = vector.load %arg7[%c0_14, %c0_15] : memref<16x128xf32, #tpu.memory_space<vmem>>, vector<16x128xf32>
    %cst_16 = arith.constant dense<0.000000e+00> : vector<16x128xf32>
    %18 = tpu.matmul %13, %16, %cst_16 {dimension_numbers = #tpu.dot_dimension_numbers<[1], [0], [0], [1], [0, 0, 1, 1], [], []>} : vector<16x4xbf16>, vector<4x128xbf16>, vector<16x128xf32> -> vector<16x128xf32>
    %19 = arith.addf %17, %18 : vector<16x128xf32>
    %c0_17 = arith.constant 0 : index
    %c0_18 = arith.constant 0 : index
    %20 = vector.load %arg7[%c0_17, %c0_18] : memref<16x128xf32, #tpu.memory_space<vmem>>, vector<16x128xf32>
    tpu.vector_store %arg7[%c0_17, %c0_18], %19 {strides = array<i32>} : memref<16x128xf32, #tpu.memory_space<vmem>>, vector<16x128xf32>,
    %c0_19 = arith.constant 0 : index
    %c0_20 = arith.constant 0 : index
    %c2 = arith.constant 2 : index
    %c0_21 = arith.constant 0 : index
    %21 = vector.load %arg3[%c0_19, %c0_20, %c2, %c0_21] : memref<1x1x18x4xbf16, #tpu.memory_space<vmem>>, vector<1x1x16x4xbf16>
    %22 = vector.shape_cast %21 : vector<1x1x16x4xbf16> to vector<16x4xbf16>
    %23 = arith.index_cast %arg2 : i32 to index
    %c8 = arith.constant 8 : index
    %c0_22 = arith.constant 0 : index
    %24 = vector.load %arg4[%23, %c8, %c0_22] : memref<3x12x128xbf16, #tpu.memory_space<vmem>>, vector<1x4x128xbf16>
    %25 = vector.shape_cast %24 : vector<1x4x128xbf16> to vector<4x128xbf16>
    %c0_23 = arith.constant 0 : index
    %c0_24 = arith.constant 0 : index
    %26 = vector.load %arg7[%c0_23, %c0_24] : memref<16x128xf32, #tpu.memory_space<vmem>>, vector<16x128xf32>
    %cst_25 = arith.constant dense<0.000000e+00> : vector<16x128xf32>
    %27 = tpu.matmul %22, %25, %cst_25 {dimension_numbers = #tpu.dot_dimension_numbers<[1], [0], [0], [1], [0, 0, 1, 1], [], []>} : vector<16x4xbf16>, vector<4x128xbf16>, vector<16x128xf32> -> vector<16x128xf32>
    %28 = arith.addf %26, %27 : vector<16x128xf32>
    %c0_26 = arith.constant 0 : index
    %c0_27 = arith.constant 0 : index
    %29 = vector.load %arg7[%c0_26, %c0_27] : memref<16x128xf32, #tpu.memory_space<vmem>>, vector<16x128xf32>
    tpu.vector_store %arg7[%c0_26, %c0_27], %28 {strides = array<i32>} : memref<16x128xf32, #tpu.memory_space<vmem>>, vector<16x128xf32>,
    %c2_i32 = arith.constant 2 : i32
    %30 = arith.cmpi eq, %arg2, %c2_i32 : i32
    %31 = arith.extui %30 : i1 to i32
    %c0_i32_28 = arith.constant 0 : i32
    %32 = arith.cmpi ne, %31, %c0_i32_28 : i32
    scf.if %32 {
      %c0_29 = arith.constant 0 : index
      %c0_30 = arith.constant 0 : index
      %33 = vector.load %arg7[%c0_29, %c0_30] : memref<16x128xf32, #tpu.memory_space<vmem>>, vector<16x128xf32>
      %c0_31 = arith.constant 0 : index
      %c0_32 = arith.constant 0 : index
      %34 = vector.load %arg5[%c0_31, %c0_32] : memref<1x128xf32, #tpu.memory_space<vmem>>, vector<1x128xf32>
      %35 = vector.broadcast %34 : vector<1x128xf32> to vector<16x128xf32>
      %36 = arith.addf %33, %35 : vector<16x128xf32>
      %cst_33 = arith.constant 0.000000e+00 : f32
      %37 = vector.broadcast %cst_33 : f32 to vector<16x128xf32>
      %38 = arith.subf %37, %36 : vector<16x128xf32>
      %39 = math.exp %38 : vector<16x128xf32>
      %cst_34 = arith.constant 1.000000e+00 : f32
      %40 = vector.broadcast %cst_34 : f32 to vector<16x128xf32>
      %41 = arith.addf %40, %39 : vector<16x128xf32>
      %42 = tpu.reciprocal %41 {approx = true} : vector<16x128xf32> -> vector<16x128xf32>
      %43 = arith.mulf %36, %42 : vector<16x128xf32>
      %c0_35 = arith.constant 0 : index
      %c0_36 = arith.constant 0 : index
      %c0_37 = arith.constant 0 : index
      %c0_38 = arith.constant 0 : index
      %44 = vector.load %arg6[%c0_35, %c0_36, %c0_37, %c0_38] : memref<1x1x16x128xf32, #tpu.memory_space<vmem>>, vector<1x1x16x128xf32>
      %45 = vector.shape_cast %44 : vector<1x1x16x128xf32> to vector<16x128xf32>
      %46 = vector.shape_cast %43 : vector<16x128xf32> to vector<1x1x16x128xf32>
      tpu.vector_store %arg6[%c0_35, %c0_36, %c0_37, %c0_38], %46 {strides = array<i32>} : memref<1x1x16x128xf32, #tpu.memory_space<vmem>>, vector<1x1x16x128xf32>,
    } else {
    }
    return
  }
  func.func @transform_0(%arg0: i32, %arg1: i32, %arg2: i32) -> (i32, i32, i32, i32) {
    %0 = arith.addi %arg1, %arg2 : i32
    %c0_i32 = arith.constant 0 : i32
    %c0_i32_0 = arith.constant 0 : i32
    %c0_i32_1 = arith.constant 0 : i32
    return %arg0, %0, %c0_i32, %c0_i32_0 : i32, i32, i32, i32
  }
  func.func @transform_1(%arg0: i32, %arg1: i32, %arg2: i32) -> (i32, i32, i32) {
    %c0_i32 = arith.constant 0 : i32
    %c0_i32_0 = arith.constant 0 : i32
    %c0_i32_1 = arith.constant 0 : i32
    %c0_i32_2 = arith.constant 0 : i32
    return %c0_i32, %c0_i32_0, %c0_i32_1 : i32, i32, i32
  }
  func.func @transform_2(%arg0: i32, %arg1: i32, %arg2: i32) -> (i32, i32) {
    %c0_i32 = arith.constant 0 : i32
    %c0_i32_0 = arith.constant 0 : i32
    %c0_i32_1 = arith.constant 0 : i32
    return %c0_i32, %c0_i32_0 : i32, i32
  }
  func.func @transform_3(%arg0: i32, %arg1: i32, %arg2: i32) -> (i32, i32, i32, i32) {
    %c0_i32 = arith.constant 0 : i32
    %c0_i32_0 = arith.constant 0 : i32
    %c0_i32_1 = arith.constant 0 : i32
    return %arg0, %arg1, %c0_i32, %c0_i32_0 : i32, i32, i32, i32
  }
}

</mosaic_0001>

<bundles_post_ra>
// kernel: tpu_custom_call.1
= control target key start
LH: loop header
LB: loop body
LE: loop exit
PB: predicated region body
PF: predicated region fallthrough
CT: control target
= control target key end

     0   :  { %8 = vsyncpa [#allocation4], 0  ;;  %s1065_s0 = inlined_call_operand.vmem [shape: bf16[2,18,18,4], index: 0, kind: input, shape index: {}]   ;;  %s1066_s1 = inlined_call_operand.vmem [shape: bf16[3,12,128], index: 1, kind: input, shape index: {}]   ;;  %s1067_s2 = inlined_call_operand.vmem [shape: f32[1,128], index: 2, kind: input, shape index: {}]   ;;  %s1068_s3 = inlined_call_operand.hbm [shape: f32[2,16,16,128], index: 3, kind: output, shape index: {}]  }
   0x1   :  { %10 = vsyncpa [#allocation4 + $0x1], 0  ;;  %s871_s12 = smov 0   ;;  %s873_s13 = smov 0  }
   0x2   :  { %s875_s14 = smov 0   ;;  %s877_s15 = smov 0  }
   0x3   :  { %s879_s16 = smov 0   ;;  %s881_s17 = smov 0  }
   0x4   :  { %s883_s18 = smov 0   ;;  %s885_s19 = smov 0  }
   0x5   :  { %s887_s20 = smov 0   ;;  %s889_s21 = smov 0  }
   0x6 LB: > { %s573_s22 = sadd.s32 4294967295, %s843_s21   ;;  %s574_s23 = sadd.s32 4294967294, %s843_s21   ;;  %s843_s21 = sphi %s889_s21, %s16_s21   ;;  %s839_s20 = sphi %s887_s20, %s1082_s20   ;;  %s835_s19 = sphi %s885_s19, %s1081_s19   ;;  %s831_s18 = sphi %s883_s18, %s1080_s18   ;;  %s827_s17 = sphi %s881_s17, %s1079_s17   ;;  %s823_s16 = sphi %s879_s16, %s1078_s16   ;;  %s819_s15 = sphi %s877_s15, %s1077_s15   ;;  %s815_s14 = sphi %s875_s14, %s1076_s14   ;;  %s811_s13 = sphi %s873_s13, %s1075_s13   ;;  %s807_s12 = sphi %s871_s12, %s1074_s12  }
   0x7   : > { %s28_s24 = sadd.s32 1, %s831_s18  ;;  %s31_s25 = sadd.s32 1, %s835_s19 }
   0x8   : > { %p29_p0 = scmp.ge.s32.totalorder %s28_s24, 3  ;;  %s35_s26 = sadd.s32 1, %s839_s20 }
   0x9   : > { %p126_p1 = scmp.ne.s32.totalorder %s815_s14, %s811_s13  ;;  %p127_p2 = scmp.eq.s32.totalorder %s573_s22, 95 }
   0xa   : > { %s1084_s24 = smov (%p29_p0, %s28_s24), 0  ;;  %s1086_s25 = smov (!%p29_p0, %s31_s25), %s835_s19 }
   0xb   : > { %p132_p3 = scmp.ne.s32.totalorder %s811_s13, %s807_s12  ;;  %p33_p4 = scmp.ge.s32.totalorder %s1086_s25, 16 }
   0xc   : > { %p133_p5 = scmp.eq.s32.totalorder %s574_s23, 95  ;;  %p933_p6 = por %p127_p2, %p126_p1 }
   0xd   : > { %s1088_s25 = smov (%p33_p4, %s1086_s25), 0  ;;  %s1090_s26 = smov (!%p33_p4, %s35_s26), %s839_s20 }
   0xe   : > { %p940_p7 = por %p133_p5, %p132_p3  ;;  %p577_p8 = scmp.ge.s32.totalorder %s843_s21, 1 }
   0xf   : > { %p37_p9 = scmp.ge.s32.totalorder %s1090_s26, 2  ;;  %p171_p10 = scmp.lt.s32.totalorder %s843_s21, 97 }
  0x10   : > { %s112_s29 = ssub.s32 %s835_s19, %s1088_s25  ;;  %s116_s5 = sadd.s32 1, %s815_s14 }
  0x11   : > { %s1092_s26 = smov (%p37_p9, %s1090_s26), 0  ;;  %p172_p11 = pnand %p577_p8, %p171_p10 }
  0x12   : > { %1072 = sst [smem:[#allocation6_spill]] %s1092_s26  ;;  %s111_s30 = ssub.s32 %s839_s20, %s1092_s26 }
  0x13   : > { %s113_s4 = sor.u32 %s112_s29, %s111_s30  ;;  %175 = sbr.rel (%p172_p11) target bundleno = 333 (0x14d), region = 32 }
  0x14   : > { %p114_p12 = scmp.eq.s32.totalorder %s113_s4, 0  ;;  %s197_s7 = sand.u32 (!%p172_p11), 1, %s811_s13  }
  0x15   : > { %s200_s8 = sadd.s32 (!%p172_p11), %s819_s15, %s823_s16  ;;  %s578_s9 = sshll.u32 (!%p172_p11), %s197_s7, 4 }
  0x16   : > { %s954_s6 = scalar_select %p114_p12, %s815_s14, %s116_s5  }
  0x17   : > { %p201_p13 = scmp.lt.s32.totalorder (!%p172_p11), %s827_s17, 1  ;;  %p203_p0 = scmp.lt.s32.totalorder (!%p172_p11), %s200_s8, 17 }
  0x18   : > { %s968_s26 = scalar_lea.vmem (!%p172_p11), [#allocation3], %s578_s9  ;;  %p580_p1 = scmp.ne.s32.totalorder (!%p172_p11), %s819_s15, 0 }
  0x1a   : > { %s202_s10 = scalar_select %p201_p13, %s827_s17, 1 }
  0x1b   : > { %s1094_s8 = smov (!%p203_p0, %s200_s8), 17  ;;  %215 = sbr.rel (%p580_p1) target bundleno = 34 (0x22), region = 36 }
  0x1c   : > { %s626_s11 = smul.u32 54, %s202_s10  ;;  %v845_v0 = vmov (!%p580_p1), 0.0  }
  0x1d   : > { %s625_s22 = smul.u32 3, %s1094_s8  ;;  %216 = vst [vmem:[#allocation2] sm:$0xff] (!%p580_p1), %v845_v0  ;;  %217 = vst [vmem:[#allocation2 + $0x8] sm:$0xff] (!%p580_p1), %v845_v0 }
  0x1f   : > { %s207_s23 = sadd.s32 %s626_s11, %s625_s22 }
  0x20   : > { %s579_s29 = sshll.u32 %s207_s23, 2 }
  0x21   : > { %s966_s5 = scalar_lea.vmem %s1065_s0, %s579_s29 }
  0x22 PF: > { %s600_s8 = sshll.u32 %s819_s15, 3  ;;  %vm235_vm0 = vcmask 1041408   ;;  %v846_v1 = vmov 0.0   ;;  %vm847_vm1 = vmmov 0   ;;  %v719_v2 = vld [vmem:[%s966_s5] sm:$0xff]   ;;  %vm231_vm2 = vcmask 31744  }
  0x23   : > { %607 = vmatprep.subr.bf16.mxu0 %v846_v1  ;;  %s222_s9 = scalar_lea.vmem %s1066_s1, %s600_s8  ;;  %609 = vmatprep.mubr.msk.bf16.mxu0 %vm847_vm1, %v846_v1  ;;  %v721_v6 = vld [vmem:[%s966_s5] sm:$0xff]   ;;  %v722_v7 = vld [vmem:[%s966_s5 + $0x8] ss:$0 sps:$4 sm:$0x11]   ;;  %vm298_vm3 = vsmask.f32 7424 }
  0x24   : > { %v223_v3 = vld [vmem:[%s222_s9] sm:$0x3]  ;;  %613 = vmatprep.subr.bf16.mxu1 %v846_v1  ;;  %615 = vmatprep.mubr.msk.bf16.mxu1 %vm847_vm1, %v846_v1  ;;  %v369_v9 = vld [vmem:[%s222_s9 + $0x4] sm:$0x3]  ;;  %v300_v10 = vshrl.u32 %v721_v6, 16  ;;  %v302_v11 = vshll.u32 %v721_v6, 16 }
  0x25   : > { %v237_v4 = vsel %vm235_vm0, %v223_v3, 0  ;;  %v720_v5 = vld [vmem:[%s222_s9] ss:$0 sps:$4 sm:$0xcc]   ;;  %v307_v12 = vshll.u32 %v722_v7, 16  ;;  %v388_v13 = vsel %vm235_vm0, %v369_v9, 0 }
  0x26   : > { %608 = vmatpush3.bf16.msra.mxu0 %v237_v4  ;;  %v314_v8 = vrot.slane %v720_v5, 2  ;;  %v723_v15 = vld [vmem:[%s966_s5] sm:$0xfe]   ;;  %v304_v16 = vrot.slane %v302_v11, 1  ;;  %vm380_vm4 = vcmask 1046528   ;;  %v224_v24 = vld [vmem:[#allocation2] sm:$0xff] }
  0x27   : > { %619 = vmatprep.subr.bf16.mxu0 %v846_v1  ;;  %v309_v17 = vrot.slane %v307_v12, 1  ;;  %v724_v18 = vld [vmem:[%s966_s5 + $0x8] ss:$0 sps:$4 sm:$0x11]   ;;  %v381_v19 = vrot.slane %v723_v15, 1  ;;  %v225_v27 = vld [vmem:[#allocation2 + $0x8] sm:$0xff] }
  0x28   : > { %v319_v14 = vsel %vm235_vm0, %v314_v8, 0  ;;  %v305_v20 = vor.u32 %v304_v16, %v300_v10  ;;  %v382_v21 = vrot.slane %v724_v18, 1  ;;  %p592_p2 = scmp.ne.s32.totalorder %s819_s15, 2 }
  0x29   : > { %610 = vmatmul.mubr.msk.bf16.vlgmr.msra.gmra.mrb[0].mxu0 %vm231_vm2, %v719_v2  ;;  %614 = vmatpush3.bf16.msra.mxu1 %v319_v14  ;;  %v593_v45 = vld [vmem:[%s1067_s2] ss:$0 sm:$0xff] (!%p592_p2) }
  0x2a   : > { %620 = vmatpush3.bf16.msra.mxu0 %v388_v13  ;;  %621 = vmatprep.mubr.msk.bf16.mxu0 %vm847_vm1, %v846_v1  ;;  %v310_v22 = vsel %vm298_vm3, %v305_v20, %v309_v17  ;;  %v383_v23 = vsel %vm380_vm4, %v381_v19, %v382_v21 }
  0x2c   : > { %616 = vmatmul.mubr.msk.bf16.vlgmr.msra.gmra.mrb[0].mxu1 %vm231_vm2, %v310_v22 }
  0x31   : > { %622 = vmatmul.mubr.msk.bf16.vlgmr.msra.gmra.mrb[4].mxu0 %vm231_vm2, %v383_v23 }
  0xfc   : > { %v273_v25 = vpop.f32.mrb[0].mxu0 }
  0xfd   : > { %v611_v26 = vpop.f32.mrb[1].mxu0  ;;  %v280_v29 = vadd.f32 %v273_v25, %v224_v24 }
  0xfe   : > { %v276_v28 = vpop.f32.mrb[2].mxu0 }
  0xff   : > { %v612_v30 = vpop.f32.mrb[3].mxu0  ;;  %v281_v31 = vadd.f32 %v276_v28, %v225_v27  ;;  %v355_v32 = vpop.f32.mrb[0].mxu1 }
 0x100   : > { %v362_v33 = vadd.f32 %v355_v32, %v280_v29  ;;  %v617_v34 = vpop.f32.mrb[1].mxu1 }
 0x101   : > { %v358_v35 = vpop.f32.mrb[2].mxu1 }
 0x102   : > { %v363_v37 = vadd.f32 %v358_v35, %v281_v31  ;;  %v618_v38 = vpop.f32.mrb[3].mxu1 }
 0x103   : > { %438 = sbr.rel (%p592_p2) target bundleno = 306 (0x132), region = 40 }
 0x104   : > { %v424_v36 = vpop.f32.mrb[4].mxu0 }
 0x105   : > { %v431_v39 = vadd.f32 %v424_v36, %v362_v33  ;;  %v623_v40 = vpop.f32.mrb[5].mxu0 }
 0x106   : > { %v427_v41 = vpop.f32.mrb[6].mxu0 }
 0x107   : > { %433 = vst [vmem:[#allocation2] sm:$0xff] %v431_v39  ;;  %v432_v42 = vadd.f32 %v427_v41, %v363_v37  ;;  %v624_v43 = vpop.f32.mrb[7].mxu0 }
 0x109   : > { %434 = vst [vmem:[#allocation2 + $0x8] sm:$0xff] %v432_v42 }
 0x10e   : > { %v439_v44 = vld [vmem:[#allocation2] sm:$0xff] }
 0x10f   : > { %v448_v47 = vadd.f32 %v593_v45, %v439_v44 }
 0x110   : > { %v440_v46 = vld [vmem:[#allocation2 + $0x8] sm:$0xff] }
 0x111   : > { %v449_v48 = vadd.f32 %v593_v45, %v440_v46  ;;  %v450_v49 = vsub.f32 0.0, %v448_v47 }
 0x113   : > { %v451_v50 = vsub.f32 0.0, %v449_v48  ;;  %v452_v51 = vmul.f32 1.442695, %v450_v49 }
 0x115   : > { %v454_v52 = vmul.f32 1.442695, %v451_v50  ;;  %725 = vpow2.f32 %v452_v51 }
 0x117   : > { %727 = vpow2.f32 %v454_v52 }
 0x11f   : > { %v726_v53 = vpop.eup %725 }
 0x120   : > { %v456_v55 = vadd.f32 1.0, %v726_v53 }
 0x121   : > { %v728_v54 = vpop.eup %727 }
 0x122   : > { %v457_v56 = vadd.f32 1.0, %v728_v54  ;;  %729 = vrcp.f32 %v456_v55 }
 0x124   : > { %731 = vrcp.f32 %v457_v56 }
 0x12c   : > { %v730_v57 = vpop.eup %729 }
 0x12d   : > { %v460_v59 = vmul.f32 %v730_v57, %v448_v47 }
 0x12e   : > { %v732_v58 = vpop.eup %731 }
 0x12f   : > { %v461_v60 = vmul.f32 %v732_v58, %v449_v48  ;;  %462 = vst [vmem:[%s968_s26] sm:$0xff] %v460_v59 }
 0x131   : > { %463 = vst [vmem:[%s968_s26 + $0x8] sm:$0xff] %v461_v60 }
 0x132 PF: > { %s595_s15 = sshll.u32 %s823_s16, 1  ;;  %s596_s29 = sshll.u32 %s827_s17, 5 }
 0x133   : > { %s480_s30 = sshll.u32 %s968_s26, 4  ;;  %s477_s4 = sadd.s32 %s596_s29, %s595_s15  ;;  %s998_s30 = int_to_ptr.vmem [resolvable:$true] %s480_s30 }
 0x134   : > { %s597_s5 = sshll.u32 %s477_s4, 7  ;;  %s1007_s9 = scalar_lea.sflag [#allocation4], %s197_s7 }
 0x135   : > { %s1003_s11 = scalar_lea.hbm %s1068_s3, %s597_s5  ;;  %s733_s22 = scalar_lea.vmem %s998_s30, 256 }
 0x136   : > { %p734_p3 = scmp.ne.s32.totalorder %s998_s30, %s733_s22  ;;  %s848_s16 = smov [#allocation3]  }
 0x137   : > { %s737_s17 = sshll.u32 %s848_s16, 4  ;;  %s738_s17 = int_to_ptr.vmem [resolvable:$false] %s737_s17 }
 0x138   : > { %p735_p4 = pnand %p734_p3, %p933_p6  ;;  %s739_s26 = scalar_lea.vmem %s738_s17, 512 }
 0x139   : > { %p740_p8 = scmp.lt.s32.totalorder %s998_s30, %s738_s17  ;;  %p741_p9 = scmp.lt.s32.totalorder %s739_s26, %s733_s22 }
 0x13a   : > { %p736_p5 = pneg %p735_p4 }
 0x13b   : > { %p742_p10 = por %p741_p9, %p740_p8 }
 0x13d   : > { %p743_p11 = pnand %p742_p10, %p736_p5 }
 0x13f   : > { %746 = shalt.err (!%p743_p11)
}
 0x140   : > { %s747_s7 = scalar_lea.hbm %s1003_s11, 256  ;;  %s751_s29 = scalar_lea.hbm %s1068_s3, 8192 }
 0x141   : > { %p748_p12 = scmp.ne.s32.totalorder %s1003_s11, %s747_s7  ;;  %p752_p1 = scmp.lt.u32.totalorder %s1003_s11, %s1068_s3 }
 0x142   : > { %p753_p2 = scmp.lt.u32.totalorder %s751_s29, %s747_s7  ;;  %p755_p4 = scmp.lt.u32.totalorder %s747_s7, %s1003_s11 }
 0x143   : > { %p749_p13 = pnand %p748_p12, %p933_p6 }
 0x144   : > { %p754_p3 = por %p753_p2, %p752_p1 }
 0x145   : > { %p750_p0 = pneg %p749_p13 }
 0x146   : > { %p756_p5 = por %p755_p4, %p754_p3 }
 0x148   : > { %p757_p8 = pnand %p756_p5, %p750_p0 }
 0x14a   : > { %760 = shalt.err (!%p757_p8)
}
 0x14b   : > { %s849_s8 = smov 128   ;;  %s850_s10 = smov 8  }
 0x14c   : > { %627 = dma.vmem_to_hbm [thread:$0]  (%p933_p6), %s998_s30, 256, %s1003_s11, %s1007_s9, %s849_s8, %s849_s8, %s850_s10  }
 0x14d PF: > { %p633_p9 = scmp.ge.s32.totalorder %s843_s21, 2  ;;  %s495_s22 = sand.u32 1, %s807_s12  }
 0x14e   : > { %s496_s16 = scalar_lea.sflag [#allocation4], %s495_s22 }
 0x14f   : > { %p630_p10 = pnand %p633_p9, %p940_p7 }
 0x151   : > { %802 = dma.done.wait (!%p630_p10), %s496_s16, 256  }
 0x152   : > { %804 = vsyncadd (!%p630_p10), %s496_s16, 4294967040  ;;  %s16_s21 = sadd.s32 1, %s843_s21   ;;  %s1073_s27 = sld [smem:[#allocation6_spill]] }
 0x153   : > { %p13_p11 = scmp.ge.s32.totalorder %s16_s21, 98   ;;  %s1074_s12 = smov %s811_s13 }
 0x154   : > { %s1075_s13 = smov %s815_s14  ;;  %s1076_s14 = smov %s954_s6 }
 0x155   : > { %s1077_s15 = smov %s831_s18  ;;  %s1078_s16 = smov %s835_s19 }
 0x156   : > { %s1079_s17 = smov %s839_s20  ;;  %s1080_s18 = smov %s1084_s24 }
 0x157   : > { %s1081_s19 = smov %s1088_s25  ;;  %15 = sbr.rel (!%p13_p11) target bundleno = 6 (0x6), region = 76 }
 0x158   : > { %s1082_s20 = smov %s1073_s27 }
 0x15e   :  { %501 = vsyncpa [#allocation4], 1 }
 0x15f   :  { %503 = vsyncpa [#allocation4 + $0x1], 1 }

</bundles_post_ra>
